<compile_context>
chip_gen: v7x
topology: tpu7x:2x2x1
jax: 0.10.0
libtpu: 0.0.40
codegen_flags: <defaults>
</compile_context>

<pallas_src>
import functools

import jax
import jax.numpy as jnp
from jax.experimental import pallas as pl
from jax.experimental.pallas import tpu as pltpu


def selector_agent_kernel(x_ref, gumbel_ref, w1_ref, b1_ref, w2_ref, b2_ref,
                          bank_ref, w3_ref, b3_ref, w4_ref, b4_ref,
                          out_ref, *, inv_temperature, hard):
    x = x_ref[...]                                                   # (TB, D_in)

    # --- selector: Linear(D_in, 64) -> ReLU -> Linear(64, T) ---
    h = jnp.dot(x, w1_ref[...], preferred_element_type=jnp.float32) + b1_ref[...]
    h = jnp.maximum(h, 0.0)
    logits = jnp.dot(h, w2_ref[...], preferred_element_type=jnp.float32) + b2_ref[...]

    z = logits + gumbel_ref[...]                                     # (TB, T)

    if hard:
        # Hard path: one_hot(argmax(logits + gumbel)) directly -- softmax is
        # monotone so the argmax is identical; skip exp/sum/divide entirely.
        # First-max tie-break (min index among maxima) matches torch.argmax.
        col = jax.lax.broadcasted_iota(jnp.int32, z.shape, 1)
        zmax = jnp.max(z, axis=-1, keepdims=True)
        big = jnp.int32(z.shape[-1])
        idx = jnp.min(jnp.where(z >= zmax, col, big), axis=-1, keepdims=True)
        weights = jnp.where(col == idx, 1.0, 0.0).astype(jnp.float32)
    else:
        # Soft path: gumbel-softmax with tau=temperature, dim=-1.
        zs = z * inv_temperature
        zs = zs - jnp.max(zs, axis=-1, keepdims=True)
        e = jnp.exp(zs)
        denom = jnp.sum(e, axis=-1, keepdims=True)
        weights = e * pl.reciprocal(denom, approx=True)              # EUP rcp

    # --- mix thought bank: (TB, T) @ (T, L) -> (TB, L) ---
    selected = jnp.dot(weights, bank_ref[...], preferred_element_type=jnp.float32)

    # --- decoder: Linear(L, 32) -> ReLU -> Linear(32, 1) ---
    d = jnp.dot(selected, w3_ref[...], preferred_element_type=jnp.float32) + b3_ref[...]
    d = jnp.maximum(d, 0.0)                                          # (TB, 32)

    # Final Linear(32 -> 1) on the VPU (no N=1 MXU pass), written lane-dense.
    out_vec = jnp.sum(d * w4_ref[...], axis=-1)                      # (TB,)
    out_ref[...] = out_vec[None, :] + b4_ref[...]                    # (1, TB)


def selector_agent_forward(x, params, gumbel, *, temperature=0.5, hard=False,
                           block_b=2048):
    """x: (B, input_dim) f32; gumbel: (B, num_thoughts) f32. Returns (B,) f32."""
    B, input_dim = x.shape
    num_thoughts, latent_dim = params["bank"].shape

    # Batch tile: biggest tile that comfortably fits VMEM; whole batch if small.
    TB = B if B <= block_b else block_b
    grid = (pl.cdiv(B, TB),)

    kernel = functools.partial(selector_agent_kernel,
                               inv_temperature=1.0 / float(temperature),
                               hard=bool(hard))

    def resident(shape):
        # Weights/biases: same block every grid step -> stay VMEM-resident.
        return pl.BlockSpec(shape, lambda i: (0, 0))

    out = pl.pallas_call(
        kernel,
        out_shape=jax.ShapeDtypeStruct((1, B), jnp.float32),
        grid=grid,
        in_specs=[
            pl.BlockSpec((TB, input_dim), lambda i: (i, 0)),       # x
            pl.BlockSpec((TB, num_thoughts), lambda i: (i, 0)),    # gumbel
            resident(params["w1"].shape),                          # (D_in, 64)
            resident(params["b1"].shape),                          # (1, 64)
            resident(params["w2"].shape),                          # (64, T)
            resident(params["b2"].shape),                          # (1, T)
            resident(params["bank"].shape),                        # (T, L)
            resident(params["w3"].shape),                          # (L, 32)
            resident(params["b3"].shape),                          # (1, 32)
            resident(params["w4"].shape),                          # (1, 32) row
            resident(params["b4"].shape),                          # (1, 1)
        ],
        out_specs=pl.BlockSpec((1, TB), lambda i: (0, i)),         # lane-dense
        compiler_params=pltpu.CompilerParams(
            dimension_semantics=("parallel",),                     # megacore on v7x
            vmem_limit_bytes=32 * 1024 * 1024,                     # safe on v5e/v6e/v7x
        ),
    )(x, gumbel, params["w1"], params["b1"], params["w2"], params["b2"],
      params["bank"], params["w3"], params["b3"], params["w4"], params["b4"])

    return out.reshape(B)


def init_params(key, input_dim, latent_dim, num_thoughts):
    """Deterministic synthetic init (shapes match the PyTorch module)."""
    ks = jax.random.split(key, 9)

    def lin(kw, kb, fan_in, fan_out):
        bound = 1.0 / jnp.sqrt(fan_in)
        w = jax.random.uniform(kw, (fan_in, fan_out), jnp.float32, -bound, bound)
        b = jax.random.uniform(kb, (1, fan_out), jnp.float32, -bound, bound)
        return w, b

    w1, b1 = lin(ks[0], ks[1], input_dim, 64)
    w2, b2 = lin(ks[2], ks[3], 64, num_thoughts)
    w3, b3 = lin(ks[4], ks[5], latent_dim, 32)
    w4_col, b4 = lin(ks[6], ks[7], 32, 1)
    w4 = w4_col.T                                   # (1, 32) row for the VPU path
    bank = jax.random.normal(ks[8], (num_thoughts, latent_dim), jnp.float32)
    return dict(w1=w1, b1=b1, w2=w2, b2=b2, w3=w3, b3=b3, w4=w4, b4=b4, bank=bank)


def reference_forward(x, params, gumbel, *, temperature=0.5, hard=False):
    """Pure-JAX reference matching the PyTorch forward."""
    h = jnp.maximum(x @ params["w1"] + params["b1"], 0.0)
    logits = h @ params["w2"] + params["b2"]
    z = (logits + gumbel) / temperature
    if hard:
        w = jax.nn.one_hot(jnp.argmax(z, axis=-1), z.shape[-1], dtype=x.dtype)
    else:
        w = jax.nn.softmax(z, axis=-1)
    sel = w @ params["bank"]
    d = jnp.maximum(sel @ params["w3"] + params["b3"], 0.0)
    return jnp.sum(d * params["w4"], axis=-1) + params["b4"][0, 0]


if __name__ == "__main__":
    B, input_dim, latent_dim, num_thoughts = 8, 16, 8, 8
    temperature = 0.5

    key = jax.random.PRNGKey(0)
    k_x, k_p, k_g = jax.random.split(key, 3)

    x = jax.random.normal(k_x, (B, input_dim), jnp.float32)
    params = init_params(k_p, input_dim, latent_dim, num_thoughts)

    # Gumbel(0,1) noise: -log(-log(U)), sampled in the wrapper (glue).
    u = jax.random.uniform(k_g, (B, num_thoughts), jnp.float32,
                           minval=1e-6, maxval=1.0 - 1e-6)
    gumbel = -jnp.log(-jnp.log(u))

    out_soft = selector_agent_forward(x, params, gumbel,
                                      temperature=temperature, hard=False)
    out_hard = selector_agent_forward(x, params, gumbel,
                                      temperature=temperature, hard=True)
    jax.block_until_ready((out_soft, out_hard))

    assert out_soft.shape == (B,) and out_soft.dtype == jnp.float32
    assert out_hard.shape == (B,) and out_hard.dtype == jnp.float32

    ref_soft = reference_forward(x, params, gumbel, temperature=temperature, hard=False)
    ref_hard = reference_forward(x, params, gumbel, temperature=temperature, hard=True)
    assert jnp.allclose(out_soft, ref_soft, rtol=5e-3, atol=5e-3), "soft path mismatch"
    assert jnp.allclose(out_hard, ref_hard, rtol=5e-3, atol=5e-3), "hard path mismatch"

    print("KERNEL_OK")
</pallas_src>

<mosaic_0001>
module attributes {stable_mosaic.version = 11 : i64} {
  func.func @selector_agent_kernel(%arg0: i32, %arg1: memref<8x16xf32, #tpu.memory_space<vmem>>, %arg2: memref<8x8xf32, #tpu.memory_space<vmem>>, %arg3: memref<16x64xf32, #tpu.memory_space<vmem>>, %arg4: memref<1x64xf32, #tpu.memory_space<vmem>>, %arg5: memref<64x8xf32, #tpu.memory_space<vmem>>, %arg6: memref<1x8xf32, #tpu.memory_space<vmem>>, %arg7: memref<8x8xf32, #tpu.memory_space<vmem>>, %arg8: memref<8x32xf32, #tpu.memory_space<vmem>>, %arg9: memref<1x32xf32, #tpu.memory_space<vmem>>, %arg10: memref<1x32xf32, #tpu.memory_space<vmem>>, %arg11: memref<1x1xf32, #tpu.memory_space<vmem>>, %arg12: memref<1x8xf32, #tpu.memory_space<vmem>>) attributes {dimension_semantics = [#tpu.dimension_semantics<parallel>], iteration_bounds = array<i64: 1>, scalar_prefetch = 0 : i64, scratch_operands = 0 : i64, tpu.core_type = #tpu.core_type<tc>, window_params = [{transform_indices = @transform_0, window_bounds = array<i64: 8, 16>}, {transform_indices = @transform_1, window_bounds = array<i64: 8, 8>}, {pipeline_mode = #tpu.pipeline_mode<synchronous>, transform_indices = @transform_2, window_bounds = array<i64: 16, 64>}, {pipeline_mode = #tpu.pipeline_mode<synchronous>, transform_indices = @transform_3, window_bounds = array<i64: 1, 64>}, {pipeline_mode = #tpu.pipeline_mode<synchronous>, transform_indices = @transform_4, window_bounds = array<i64: 64, 8>}, {pipeline_mode = #tpu.pipeline_mode<synchronous>, transform_indices = @transform_5, window_bounds = array<i64: 1, 8>}, {pipeline_mode = #tpu.pipeline_mode<synchronous>, transform_indices = @transform_6, window_bounds = array<i64: 8, 8>}, {pipeline_mode = #tpu.pipeline_mode<synchronous>, transform_indices = @transform_7, window_bounds = array<i64: 8, 32>}, {pipeline_mode = #tpu.pipeline_mode<synchronous>, transform_indices = @transform_8, window_bounds = array<i64: 1, 32>}, {pipeline_mode = #tpu.pipeline_mode<synchronous>, transform_indices = @transform_9, window_bounds = array<i64: 1, 32>}, {pipeline_mode = #tpu.pipeline_mode<synchronous>, transform_indices = @transform_10, window_bounds = array<i64: 1, 1>}, {transform_indices = @transform_11, window_bounds = array<i64: 1, 8>}]} {
    %c0 = arith.constant 0 : index
    %c0_0 = arith.constant 0 : index
    %0 = vector.load %arg1[%c0, %c0_0] : memref<8x16xf32, #tpu.memory_space<vmem>>, vector<8x16xf32>
    %c0_1 = arith.constant 0 : index
    %c0_2 = arith.constant 0 : index
    %1 = vector.load %arg3[%c0_1, %c0_2] : memref<16x64xf32, #tpu.memory_space<vmem>>, vector<16x64xf32>
    %cst = arith.constant dense<0.000000e+00> : vector<8x64xf32>
    %2 = tpu.matmul %0, %1, %cst {dimension_numbers = #tpu.dot_dimension_numbers<[1], [0], [0], [1], [0, 0, 1, 1], [], []>} : vector<8x16xf32>, vector<16x64xf32>, vector<8x64xf32> -> vector<8x64xf32>
    %c0_3 = arith.constant 0 : index
    %c0_4 = arith.constant 0 : index
    %3 = vector.load %arg4[%c0_3, %c0_4] : memref<1x64xf32, #tpu.memory_space<vmem>>, vector<1x64xf32>
    %4 = vector.broadcast %3 : vector<1x64xf32> to vector<8x64xf32>
    %5 = arith.addf %2, %4 : vector<8x64xf32>
    %cst_5 = arith.constant 0.000000e+00 : f32
    %6 = vector.broadcast %cst_5 : f32 to vector<8x64xf32>
    %7 = arith.maximumf %5, %6 : vector<8x64xf32>
    %c0_6 = arith.constant 0 : index
    %c0_7 = arith.constant 0 : index
    %8 = vector.load %arg5[%c0_6, %c0_7] : memref<64x8xf32, #tpu.memory_space<vmem>>, vector<64x8xf32>
    %cst_8 = arith.constant dense<0.000000e+00> : vector<8x8xf32>
    %9 = tpu.matmul %7, %8, %cst_8 {dimension_numbers = #tpu.dot_dimension_numbers<[1], [0], [0], [1], [0, 0, 1, 1], [], []>} : vector<8x64xf32>, vector<64x8xf32>, vector<8x8xf32> -> vector<8x8xf32>
    %c0_9 = arith.constant 0 : index
    %c0_10 = arith.constant 0 : index
    %10 = vector.load %arg6[%c0_9, %c0_10] : memref<1x8xf32, #tpu.memory_space<vmem>>, vector<1x8xf32>
    %11 = vector.broadcast %10 : vector<1x8xf32> to vector<8x8xf32>
    %12 = arith.addf %9, %11 : vector<8x8xf32>
    %c0_11 = arith.constant 0 : index
    %c0_12 = arith.constant 0 : index
    %13 = vector.load %arg2[%c0_11, %c0_12] : memref<8x8xf32, #tpu.memory_space<vmem>>, vector<8x8xf32>
    %14 = arith.addf %12, %13 : vector<8x8xf32>
    %cst_13 = arith.constant 2.000000e+00 : f32
    %15 = vector.broadcast %cst_13 : f32 to vector<8x8xf32>
    %16 = arith.mulf %14, %15 : vector<8x8xf32>
    %cst_14 = arith.constant dense<0xFF800000> : vector<8xf32>
    %17 = vector.multi_reduction <maximumf>, %16, %cst_14 [1] : vector<8x8xf32> to vector<8xf32>
    %18 = vector.shape_cast %17 : vector<8xf32> to vector<8x1xf32>
    %19 = vector.broadcast %18 : vector<8x1xf32> to vector<8x8xf32>
    %20 = arith.subf %16, %19 : vector<8x8xf32>
    %21 = math.exp %20 : vector<8x8xf32>
    %cst_15 = arith.constant dense<0.000000e+00> : vector<8xf32>
    %22 = vector.multi_reduction <add>, %21, %cst_15 [1] : vector<8x8xf32> to vector<8xf32>
    %23 = vector.shape_cast %22 : vector<8xf32> to vector<8x1xf32>
    %24 = tpu.reciprocal %23 {approx = true} : vector<8x1xf32> -> vector<8x1xf32>
    %25 = vector.broadcast %24 : vector<8x1xf32> to vector<8x8xf32>
    %26 = arith.mulf %21, %25 : vector<8x8xf32>
    %c0_16 = arith.constant 0 : index
    %c0_17 = arith.constant 0 : index
    %27 = vector.load %arg7[%c0_16, %c0_17] : memref<8x8xf32, #tpu.memory_space<vmem>>, vector<8x8xf32>
    %cst_18 = arith.constant dense<0.000000e+00> : vector<8x8xf32>
    %28 = tpu.matmul %26, %27, %cst_18 {dimension_numbers = #tpu.dot_dimension_numbers<[1], [0], [0], [1], [0, 0, 1, 1], [], []>} : vector<8x8xf32>, vector<8x8xf32>, vector<8x8xf32> -> vector<8x8xf32>
    %c0_19 = arith.constant 0 : index
    %c0_20 = arith.constant 0 : index
    %29 = vector.load %arg8[%c0_19, %c0_20] : memref<8x32xf32, #tpu.memory_space<vmem>>, vector<8x32xf32>
    %cst_21 = arith.constant dense<0.000000e+00> : vector<8x32xf32>
    %30 = tpu.matmul %28, %29, %cst_21 {dimension_numbers = #tpu.dot_dimension_numbers<[1], [0], [0], [1], [0, 0, 1, 1], [], []>} : vector<8x8xf32>, vector<8x32xf32>, vector<8x32xf32> -> vector<8x32xf32>
    %c0_22 = arith.constant 0 : index
    %c0_23 = arith.constant 0 : index
    %31 = vector.load %arg9[%c0_22, %c0_23] : memref<1x32xf32, #tpu.memory_space<vmem>>, vector<1x32xf32>
    %32 = vector.broadcast %31 : vector<1x32xf32> to vector<8x32xf32>
    %33 = arith.addf %30, %32 : vector<8x32xf32>
    %cst_24 = arith.constant 0.000000e+00 : f32
    %34 = vector.broadcast %cst_24 : f32 to vector<8x32xf32>
    %35 = arith.maximumf %33, %34 : vector<8x32xf32>
    %c0_25 = arith.constant 0 : index
    %c0_26 = arith.constant 0 : index
    %36 = vector.load %arg10[%c0_25, %c0_26] : memref<1x32xf32, #tpu.memory_space<vmem>>, vector<1x32xf32>
    %37 = vector.broadcast %36 : vector<1x32xf32> to vector<8x32xf32>
    %38 = arith.mulf %35, %37 : vector<8x32xf32>
    %cst_27 = arith.constant dense<0.000000e+00> : vector<8xf32>
    %39 = vector.multi_reduction <add>, %38, %cst_27 [1] : vector<8x32xf32> to vector<8xf32>
    %40 = vector.shape_cast %39 : vector<8xf32> to vector<1x8xf32>
    %c0_28 = arith.constant 0 : index
    %c0_29 = arith.constant 0 : index
    %41 = vector.load %arg11[%c0_28, %c0_29] : memref<1x1xf32, #tpu.memory_space<vmem>>, vector<1x1xf32>
    %42 = vector.broadcast %41 : vector<1x1xf32> to vector<1x8xf32>
    %43 = arith.addf %40, %42 : vector<1x8xf32>
    %c0_30 = arith.constant 0 : index
    %c0_31 = arith.constant 0 : index
    %44 = vector.load %arg12[%c0_30, %c0_31] : memref<1x8xf32, #tpu.memory_space<vmem>>, vector<1x8xf32>
    tpu.vector_store %arg12[%c0_30, %c0_31], %43 {strides = array<i32>} : memref<1x8xf32, #tpu.memory_space<vmem>>, vector<1x8xf32>,
    return
  }
  func.func @transform_0(%arg0: i32) -> (i32, i32) {
    %c0_i32 = arith.constant 0 : i32
    %c0_i32_0 = arith.constant 0 : i32
    return %arg0, %c0_i32 : i32, i32
  }
  func.func @transform_1(%arg0: i32) -> (i32, i32) {
    %c0_i32 = arith.constant 0 : i32
    %c0_i32_0 = arith.constant 0 : i32
    return %arg0, %c0_i32 : i32, i32
  }
  func.func @transform_2(%arg0: i32) -> (i32, i32) {
    %c0_i32 = arith.constant 0 : i32
    %c0_i32_0 = arith.constant 0 : i32
    %c0_i32_1 = arith.constant 0 : i32
    return %c0_i32, %c0_i32_0 : i32, i32
  }
  func.func @transform_3(%arg0: i32) -> (i32, i32) {
    %c0_i32 = arith.constant 0 : i32
    %c0_i32_0 = arith.constant 0 : i32
    %c0_i32_1 = arith.constant 0 : i32
    return %c0_i32, %c0_i32_0 : i32, i32
  }
  func.func @transform_4(%arg0: i32) -> (i32, i32) {
    %c0_i32 = arith.constant 0 : i32
    %c0_i32_0 = arith.constant 0 : i32
    %c0_i32_1 = arith.constant 0 : i32
    return %c0_i32, %c0_i32_0 : i32, i32
  }
  func.func @transform_5(%arg0: i32) -> (i32, i32) {
    %c0_i32 = arith.constant 0 : i32
    %c0_i32_0 = arith.constant 0 : i32
    %c0_i32_1 = arith.constant 0 : i32
    return %c0_i32, %c0_i32_0 : i32, i32
  }
  func.func @transform_6(%arg0: i32) -> (i32, i32) {
    %c0_i32 = arith.constant 0 : i32
    %c0_i32_0 = arith.constant 0 : i32
    %c0_i32_1 = arith.constant 0 : i32
    return %c0_i32, %c0_i32_0 : i32, i32
  }
  func.func @transform_7(%arg0: i32) -> (i32, i32) {
    %c0_i32 = arith.constant 0 : i32
    %c0_i32_0 = arith.constant 0 : i32
    %c0_i32_1 = arith.constant 0 : i32
    return %c0_i32, %c0_i32_0 : i32, i32
  }
  func.func @transform_8(%arg0: i32) -> (i32, i32) {
    %c0_i32 = arith.constant 0 : i32
    %c0_i32_0 = arith.constant 0 : i32
    %c0_i32_1 = arith.constant 0 : i32
    return %c0_i32, %c0_i32_0 : i32, i32
  }
  func.func @transform_9(%arg0: i32) -> (i32, i32) {
    %c0_i32 = arith.constant 0 : i32
    %c0_i32_0 = arith.constant 0 : i32
    %c0_i32_1 = arith.constant 0 : i32
    return %c0_i32, %c0_i32_0 : i32, i32
  }
  func.func @transform_10(%arg0: i32) -> (i32, i32) {
    %c0_i32 = arith.constant 0 : i32
    %c0_i32_0 = arith.constant 0 : i32
    %c0_i32_1 = arith.constant 0 : i32
    return %c0_i32, %c0_i32_0 : i32, i32
  }
  func.func @transform_11(%arg0: i32) -> (i32, i32) {
    %c0_i32 = arith.constant 0 : i32
    %c0_i32_0 = arith.constant 0 : i32
    return %c0_i32, %arg0 : i32, i32
  }
}

</mosaic_0001>

<bundles_post_ra>
// kernel: tpu_custom_call.1
= control target key start
LH: loop header
LB: loop body
LE: loop exit
PB: predicated region body
PF: predicated region fallthrough
CT: control target
= control target key end

     0   :  { %s691_s0 = inlined_call_operand.vmem [shape: f32[8,16], index: 0, kind: input, shape index: {}]   ;;  %s692_s1 = inlined_call_operand.vmem [shape: f32[8,8], index: 1, kind: input, shape index: {}]   ;;  %s693_s2 = inlined_call_operand.vmem [shape: f32[16,64], index: 2, kind: input, shape index: {}]   ;;  %s694_s3 = inlined_call_operand.vmem [shape: f32[1,64], index: 3, kind: input, shape index: {}]   ;;  %s695_s4 = inlined_call_operand.vmem [shape: f32[64,8], index: 4, kind: input, shape index: {}]   ;;  %s696_s5 = inlined_call_operand.vmem [shape: f32[1,8], index: 5, kind: input, shape index: {}]   ;;  %s697_s6 = inlined_call_operand.vmem [shape: f32[8,8], index: 6, kind: input, shape index: {}]   ;;  %s698_s7 = inlined_call_operand.vmem [shape: f32[8,32], index: 7, kind: input, shape index: {}]   ;;  %s699_s8 = inlined_call_operand.vmem [shape: f32[1,32], index: 8, kind: input, shape index: {}]   ;;  %s700_s9 = inlined_call_operand.vmem [shape: f32[1,32], index: 9, kind: input, shape index: {}]   ;;  %s701_s10 = inlined_call_operand.<no memory space> [shape: f32[1,1], index: 10, kind: input, shape index: {}]   ;;  %s702_s11 = inlined_call_operand.hbm [shape: f32[1,8], index: 11, kind: output, shape index: {}]  }
   0x1   :  { %v16_v0 = vstv %s701_s10 }
   0x2   :  { %17 = vst [vmem:[#allocation2] sm:$0x1] %v16_v0 }
   0x3   :  { %v42_v1 = vld [vmem:[%s693_s2] sm:$0xff]  ;;  %v43_v2 = vld [vmem:[%s693_s2 + $0x8] sm:$0xff]  ;;  %v543_v3 = vmov 0.0|0.0   ;;  %vm544_vm0 = vmmov 0   ;;  %v545_v5 = vmov 0.0   ;;  %v128_v8 = vld [vmem:[%s695_s4 + $0x10] sm:$0xff] }
   0x4   :  { %493 = vmatprep.subr.bf16.mxu0 %v543_v3  ;;  %v494_v4 = vpack.c.bf16 %v43_v2, %v42_v1  ;;  %461 = vmatprep.mubr.msk.f32.mxu0 %vm544_vm0, %v545_v5  ;;  %v126_v6 = vld [vmem:[%s695_s4] sm:$0xff]  ;;  %v127_v7 = vld [vmem:[%s695_s4 + $0x8] sm:$0xff]  ;;  %v129_v10 = vld [vmem:[%s695_s4 + $0x18] sm:$0xff]  ;;  %vm51_vm1 = vcmask 130048  }
   0x5   :  { %496 = vmatprep.subr.bf16.mxu1 %v543_v3  ;;  %v497_v9 = vpack.c.bf16 %v127_v7, %v126_v6  ;;  %480 = vmatprep.mubr.msk.f32.mxu1 %vm544_vm0, %v545_v5  ;;  %v41_v11 = vld [vmem:[%s691_s0] sm:$0xff] }
   0x6   :  { %495 = vmatpush3.bf16.msra.mxu0 %v494_v4 }
   0x7   :  { %18 = vsyncpa [#allocation4], 0  ;;  %498 = vmatpush3.bf16.msra.mxu1 %v497_v9  ;;  %v500_v12 = vpack.c.bf16 %v129_v10, %v128_v8  ;;  %483 = vmatprep.subr.mxu0 %v545_v5  ;;  %v130_v13 = vld [vmem:[%s695_s4 + $0x20] sm:$0xff]  ;;  %v131_v14 = vld [vmem:[%s695_s4 + $0x28] sm:$0xff]  ;;  %vm141_vm2 = vcmask 523264   ;;  %vm218_vm3 = vcmask 64512   ;;  %v404_v54 = vlaneseq }
   0x8   :  { %499 = vmatprep.subr.bf16.mxu1 %v543_v3  ;;  %v503_v15 = vpack.c.bf16 %v131_v14, %v130_v13  ;;  %v132_v16 = vld [vmem:[%s695_s4 + $0x30] sm:$0xff]  ;;  %v133_v17 = vld [vmem:[%s695_s4 + $0x38] sm:$0xff]  ;;  %v433_v19 = vld [vmem:[%s694_s3] ss:$0 sm:$0xff]  ;;  %v546_v44 = vmov 0   ;;  %vm394_vm4 = vcmask 261120  }
   0x9   :  { %462 = vmatmul.mubr.msk.f32.vlgmr.msra.gmra.mrb[0].mxu0 %vm51_vm1, %v41_v11  ;;  %v506_v18 = vpack.c.bf16 %v133_v17, %v132_v16  ;;  %v435_v24 = vld [vmem:[%s696_s5] ss:$0 sm:$0xff]  ;;  %513 = vset.pattern.permute.xlu1 %v546_v44  ;;  %v405_v55 = vshrl.u32 %v404_v54, 7  ;;  %v411_v58 = vand.u32 127, %v404_v54  ;;  %vm417_vm5 = vcmask 57344  }
   0xa   :  { %485 = vmatprep.mubr.msk.f32.mxu0 %vm544_vm0, %v545_v5  ;;  %v215_v26 = vld [vmem:[%s692_s1] sm:$0xff]  ;;  %514 = vset.pattern.permute.xlu0 %v546_v44 }
   0xb   :  { %501 = vmatpush3.bf16.msra.mxu1 %v500_v12  ;;  %v230_v37 = vld [vmem:[%s697_s6] sm:$0xff]  ;;  %v406_v57 = vsub.s32 0, %v405_v55  ;;  %v414_v61 = vsub.s32 %v411_v58, %v405_v55 }
   0xc   :  { %502 = vmatprep.subr.bf16.mxu1 %v543_v3  ;;  %484 = vmatpush3.msra.mxu0 %v230_v37  ;;  %v304_v41 = vld [vmem:[%s698_s7] sm:$0xff] }
   0xd   :  { %488 = vmatprep.subr.mxu0 %v545_v5  ;;  %v438_v45 = vld [vmem:[%s699_s8] ss:$0 sm:$0xff]  ;;  %s547_s8 = smov [#allocation3]  }
   0xe   :  { %v440_v49 = vld [vmem:[%s700_s9] ss:$0 sm:$0xff]  ;;  %s425_s26 = sshll.u32 %s547_s8, 4  ;;  %s426_s26 = int_to_ptr.vmem [resolvable:$true] %s425_s26 }
   0xf   :  { %504 = vmatpush3.bf16.msra.mxu1 %v503_v15  ;;  %v398_v53 = vld [vmem:[#allocation2] sm:$0x1]  ;;  %s519_s9 = scalar_lea.vmem %s426_s26, 16  ;;  %s523_s27 = scalar_lea.vmem %s426_s26, 32 }
  0x10   :  { %505 = vmatprep.subr.bf16.mxu1 %v543_v3  ;;  %p520_p0 = scmp.ne.s32.totalorder %s426_s26, %s519_s9  ;;  %p524_p1 = scmp.lt.s32.totalorder %s426_s26, %s426_s26 }
  0x11   :  { %p525_p2 = scmp.lt.s32.totalorder %s523_s27, %s519_s9 }
  0x13   :  { %507 = vmatpush3.bf16.msra.mxu1 %v506_v18  ;;  %p526_p3 = por %p525_p2, %p524_p1 }
  0x15   :  { %p527_p4 = pnand %p526_p3, %p520_p0 }
  0xdc   :  { %v121_v20 = vpop.f32.mrb[0].mxu0 }
  0xdd   :  { %v122_v21 = vadd.f32 %v433_v19, %v121_v20  ;;  %v463_v22 = vpop.f32.mrb[1].mxu0 }
  0xdf   :  { %v125_v23 = vmax.f32 %v122_v21, 0.0 }
  0xe1   :  { %481 = vmatmul.mubr.msk.f32.vlgmr.msra.gmra.mrb[0].mxu1 %vm141_vm2, %v125_v23 }
 0x1b4   :  { %v211_v25 = vpop.f32.mrb[0].mxu1 }
 0x1b5   :  { %v212_v27 = vadd.f32 %v435_v24, %v211_v25  ;;  %v482_v28 = vpop.f32.mrb[1].mxu1 }
 0x1b7   :  { %v216_v29 = vadd.f32 %v215_v26, %v212_v27 }
 0x1b9   :  { %v217_v30 = vmul.f32 2.0, %v216_v29 }
 0x1bb   :  { %v219_v31 = vsel %vm218_vm3, %v217_v30, -inf }
 0x1bc   :  { %220 = vmax.xlane.f32.xlu0 %v219_v31 }
 0x249   :  { %v221_v32 = vpop.xlane.xlu0 %220 }
 0x24a   :  { %v222_v33 = vsub.f32 %v217_v30, %v221_v32 }
 0x24c   :  { %v223_v34 = vmul.f32 1.442695, %v222_v33 }
 0x24e   :  { %515 = vpow2.f32 %v223_v34 }
 0x258   :  { %v516_v35 = vpop.eup %515 }
 0x259   :  { %v225_v36 = vsel %vm218_vm3, %v516_v35, 0.0 }
 0x25a   :  { %226 = vadd.xlane.f32.xlu0 %v225_v36 }
 0x2e7   :  { %v227_v38 = vpop.xlane.xlu0 %226 }
 0x2e8   :  { %517 = vrcp.f32 %v227_v38 }
 0x2f2   :  { %v518_v39 = vpop.eup %517 }
 0x2f3   :  { %v229_v40 = vmul.f32 %v518_v39, %v516_v35 }
 0x2f5   :  { %486 = vmatmul.mubr.msk.f32.vlgmr.msra.gmra.mrb[2].mxu0 %vm218_vm3, %v229_v40 }
 0x2f6   :  { %489 = vmatpush3.msra.mxu0 %v304_v41  ;;  %490 = vmatprep.mubr.msk.f32.mxu0 %vm544_vm0, %v545_v5 }
 0x3c8   :  { %v300_v42 = vpop.f32.mrb[2].mxu0 }
 0x3c9   :  { %v487_v43 = vpop.f32.mrb[3].mxu0  ;;  %491 = vmatmul.mubr.msk.f32.vlgmr.msra.gmra.mrb[4].mxu0 %vm218_vm3, %v300_v42 }
 0x49c   :  { %v381_v46 = vpop.f32.mrb[4].mxu0 }
 0x49d   :  { %v382_v47 = vadd.f32 %v438_v45, %v381_v46  ;;  %v492_v48 = vpop.f32.mrb[5].mxu0 }
 0x49f   :  { %v385_v50 = vmax.f32 %v382_v47, 0.0 }
 0x4a1   :  { %v393_v51 = vmul.f32 %v440_v49, %v385_v50 }
 0x4a3   :  { %v395_v52 = vsel %vm394_vm4, %v393_v51, 0.0 }
 0x4a4   :  { %396 = vadd.xlane.f32.xlu1 %v395_v52 }
 0x4b5   :  { %401 = vperm.xlu1 %513, %v398_v53  }
 0x531   :  { %v397_v56 = vpop.xlane.xlu1 %396 }
 0x535   :  { %v402_v59 = vpop.permute.xlu1 %401 }
 0x536   :  { %v407_v60 = vrot.slane %v402_v59, %v406_v57 }
 0x538   :  { %v408_v62 = vadd.f32 %v407_v60, %v397_v56 }
 0x53a   :  { %v415_v63 = vrot.slane %v408_v62, %v414_v61 }
 0x53c   :  { %418 = vst.msk [vmem:[#allocation3] sm:$0x1] %vm417_vm5, %v415_v63 }
 0x53d   :  { %530 = shalt.err (!%p527_p4)
}
 0x53e   :  { %s531_s29 = scalar_lea.hbm %s702_s11, 16 }
 0x53f   :  { %p532_p5 = scmp.ne.s32.totalorder %s702_s11, %s531_s29  ;;  %p535_p6 = scmp.lt.u32.totalorder %s531_s29, %s702_s11 }
 0x541   :  { %p537_p7 = pnand %p535_p6, %p532_p5 }
 0x543   :  { %540 = shalt.err (!%p537_p7)
}
 0x544   :  { %428 = dma.vmem_to_hbm [thread:$0]  %s426_s26, 16, %s702_s11, [#allocation4]  }
 0x545   :  { %541 = dma.done.wait [#allocation4], 16  }
 0x546   :  { %542 = vsyncadd [#allocation4], 4294967280 }
 0x547   :  { %432 = vsyncpa [#allocation4], 1 }

</bundles_post_ra>
